<compile_context>
chip_gen: v6e
topology: v6e:2x2x1
jax: 0.10.0
libtpu: 0.0.40
codegen_flags: <defaults>
</compile_context>

<pallas_src>
import jax
import jax.numpy as jnp
from jax.experimental import pallas as pl
from jax.experimental.pallas import tpu as pltpu


def mlp_kernel(x_ref, w1_ref, b1_ref, w2_ref, b2_ref, w3_ref, b3_ref, o_ref):
    # x tile: [TM, D_in] -> bf16 for the MXU (input HBM bytes unchanged; the
    # cast only affects VMEM/compute).
    xb = x_ref[...].astype(jnp.bfloat16)

    # h1 = relu(x @ W1 + b1)   (bf16 matmul, f32 accumulate, f32 elementwise)
    h1 = jnp.dot(xb, w1_ref[...], preferred_element_type=jnp.float32)
    h1 = jnp.maximum(h1 + b1_ref[...], 0.0)

    # h2 = relu(h1 @ W2 + b2)
    h2 = jnp.dot(h1.astype(jnp.bfloat16), w2_ref[...],
                 preferred_element_type=jnp.float32)
    h2 = jnp.maximum(h2 + b2_ref[...], 0.0)            # [TM, H2] f32

    # Final 1-wide projection on the VPU/XLU (skip a 1-column MXU matmul):
    #   out[r] = sum_k h2[r, k] * w3[k] + b3
    out = jnp.sum(h2 * w3_ref[...], axis=-1) + b3_ref[0, 0]   # [TM] f32

    # Dense store: (8, TM//8) slab on the tiled path, (1, B) for small batches.
    o_ref[...] = out.reshape(o_ref.shape).astype(o_ref.dtype)


def _choose_tile_m(batch, max_tile=4096):
    """Batch tile: whole batch if small; else a multiple of 1024 aiming for
    >= 2 tiles (megacore) and capped at max_tile (VMEM budget)."""
    if batch <= 1024:
        return batch
    t = (batch // 2) // 1024 * 1024
    return max(1024, min(max_tile, t))


def hit_order_classifier(x, params, *, max_tile=4096):
    """x: [B, input_dim]; returns [B, 1] float32 (same semantics as the module)."""
    w1, b1, w2, b2, w3, b3 = params
    B, d_in = x.shape
    hid = w1.shape[1]
    hid2 = w2.shape[1]

    tile_m = _choose_tile_m(B, max_tile)
    num_tiles = pl.cdiv(B, tile_m)
    # Dense (8, tile_m//8) output slab when possible; otherwise one (1, B) row.
    out_rows = 8 if tile_m % 1024 == 0 else 1
    cols = tile_m // out_rows

    # MXU-feeding weights in bf16 (tiny, pinned in VMEM across grid steps).
    w1b = w1.astype(jnp.bfloat16)
    w2b = w2.astype(jnp.bfloat16)
    b1f = b1.reshape(1, hid).astype(jnp.float32)
    b2f = b2.reshape(1, hid2).astype(jnp.float32)
    w3_row = w3.reshape(1, hid2).astype(jnp.float32)   # VPU row for final proj
    b3_s = b3.reshape(1, 1).astype(jnp.float32)        # scalar via SMEM

    out = pl.pallas_call(
        mlp_kernel,
        out_shape=jax.ShapeDtypeStruct((num_tiles * out_rows, cols), jnp.float32),
        grid=(num_tiles,),
        in_specs=[
            pl.BlockSpec((tile_m, d_in), lambda i: (i, 0)),   # x tile (ragged tail OK)
            pl.BlockSpec((d_in, hid),   lambda i: (0, 0)),    # W1 (resident)
            pl.BlockSpec((1, hid),      lambda i: (0, 0)),    # b1
            pl.BlockSpec((hid, hid2),   lambda i: (0, 0)),    # W2
            pl.BlockSpec((1, hid2),     lambda i: (0, 0)),    # b2
            pl.BlockSpec((1, hid2),     lambda i: (0, 0)),    # w3 row
            pl.BlockSpec((1, 1), lambda i: (0, 0),
                         memory_space=pltpu.MemorySpace.SMEM),  # b3 scalar
        ],
        out_specs=pl.BlockSpec((out_rows, cols), lambda i: (i, 0)),
        compiler_params=pltpu.CompilerParams(
            dimension_semantics=("parallel",),
            vmem_limit_bytes=48 * 1024 * 1024,
        ),
    )(x, w1b, b1f, w2b, b2f, w3_row, b3_s)

    # (num_tiles*out_rows, cols) row-major flatten preserves batch order;
    # garbage rows from the ragged last tile are sliced off here.
    return out.reshape(num_tiles * tile_m, 1)[:B]


def init_params(key, input_dim, hidden_dim=128, dtype=jnp.float32):
    """Synthetic parameters; Linear weights stored as [in, out]."""
    h2 = hidden_dim // 2
    ks = jax.random.split(key, 6)
    w1 = jax.random.normal(ks[0], (input_dim, hidden_dim), dtype) * (1.0 / jnp.sqrt(input_dim))
    b1 = jax.random.normal(ks[1], (1, hidden_dim), dtype) * 0.01
    w2 = jax.random.normal(ks[2], (hidden_dim, h2), dtype) * (1.0 / jnp.sqrt(hidden_dim))
    b2 = jax.random.normal(ks[3], (1, h2), dtype) * 0.01
    w3 = jax.random.normal(ks[4], (h2, 1), dtype) * (1.0 / jnp.sqrt(h2))
    b3 = jax.random.normal(ks[5], (1, 1), dtype) * 0.01
    return (w1, b1, w2, b2, w3, b3)


def reference_forward_f32(x, params):
    """Pure-f32 reference (module semantics)."""
    w1, b1, w2, b2, w3, b3 = params
    h1 = jnp.maximum(x @ w1 + b1, 0.0)
    h2 = jnp.maximum(h1 @ w2 + b2, 0.0)
    return h2 @ w3 + b3


def reference_forward_matched(x, params):
    """Reference matching the kernel's bf16-matmul / f32-accumulate math."""
    w1, b1, w2, b2, w3, b3 = params
    xb = x.astype(jnp.bfloat16)
    h1 = jnp.maximum(
        jnp.dot(xb, w1.astype(jnp.bfloat16), preferred_element_type=jnp.float32) + b1, 0.0)
    h2 = jnp.maximum(
        jnp.dot(h1.astype(jnp.bfloat16), w2.astype(jnp.bfloat16),
                preferred_element_type=jnp.float32) + b2, 0.0)
    return jnp.sum(h2 * w3.reshape(1, -1), axis=-1, keepdims=True) + b3.reshape(1, 1)


if __name__ == "__main__":
    key = jax.random.PRNGKey(0)
    batch, input_dim, hidden_dim = 8, 32, 128  # module default hidden_dim=128

    kx, kp = jax.random.split(key)
    x = jax.random.normal(kx, (batch, input_dim), jnp.float32)
    params = init_params(kp, input_dim, hidden_dim)

    out = jax.block_until_ready(hit_order_classifier(x, params))
    assert out.shape == (batch, 1)
    assert out.dtype == jnp.float32

    ref_match = reference_forward_matched(x, params)
    ref_f32 = reference_forward_f32(x, params)
    assert jnp.allclose(out, ref_match, atol=1e-2, rtol=1e-2)
    # bf16 MXU inputs vs pure-f32 reference: loose tolerance by construction.
    assert jnp.allclose(out, ref_f32, atol=1e-1, rtol=1e-1)

    # Also exercise the multi-tile path with a ragged last block (no jnp.pad).
    B2 = 2310
    x2 = jax.random.normal(jax.random.PRNGKey(1), (B2, input_dim), jnp.float32)
    out2 = jax.block_until_ready(hit_order_classifier(x2, params))
    assert out2.shape == (B2, 1)
    assert jnp.allclose(out2, reference_forward_matched(x2, params), atol=1e-2, rtol=1e-2)

    print("KERNEL_OK")
</pallas_src>

<mosaic_0001>
module attributes {stable_mosaic.version = 11 : i64} {
  func.func @mlp_kernel(%arg0: i32, %arg1: memref<8x32xf32, #tpu.memory_space<vmem>>, %arg2: memref<32x128xbf16, #tpu.memory_space<vmem>>, %arg3: memref<1x128xf32, #tpu.memory_space<vmem>>, %arg4: memref<128x64xbf16, #tpu.memory_space<vmem>>, %arg5: memref<1x64xf32, #tpu.memory_space<vmem>>, %arg6: memref<1x64xf32, #tpu.memory_space<vmem>>, %arg7: memref<1x1xf32, #tpu.memory_space<smem>>, %arg8: memref<1x8xf32, #tpu.memory_space<vmem>>) attributes {dimension_semantics = [#tpu.dimension_semantics<parallel>], iteration_bounds = array<i64: 1>, scalar_prefetch = 0 : i64, scratch_operands = 0 : i64, tpu.core_type = #tpu.core_type<tc>, window_params = [{transform_indices = @transform_0, window_bounds = array<i64: 8, 32>}, {pipeline_mode = #tpu.pipeline_mode<synchronous>, transform_indices = @transform_1, window_bounds = array<i64: 32, 128>}, {pipeline_mode = #tpu.pipeline_mode<synchronous>, transform_indices = @transform_2, window_bounds = array<i64: 1, 128>}, {pipeline_mode = #tpu.pipeline_mode<synchronous>, transform_indices = @transform_3, window_bounds = array<i64: 128, 64>}, {pipeline_mode = #tpu.pipeline_mode<synchronous>, transform_indices = @transform_4, window_bounds = array<i64: 1, 64>}, {pipeline_mode = #tpu.pipeline_mode<synchronous>, transform_indices = @transform_5, window_bounds = array<i64: 1, 64>}, {transform_indices = @transform_6, window_bounds = array<i64: 1, 1>}, {transform_indices = @transform_7, window_bounds = array<i64: 1, 8>}]} {
    %c0 = arith.constant 0 : index
    %c0_0 = arith.constant 0 : index
    %0 = vector.load %arg1[%c0, %c0_0] : memref<8x32xf32, #tpu.memory_space<vmem>>, vector<8x32xf32>
    %1 = arith.truncf %0 : vector<8x32xf32> to vector<8x32xbf16>
    %c0_1 = arith.constant 0 : index
    %c0_2 = arith.constant 0 : index
    %2 = vector.load %arg2[%c0_1, %c0_2] : memref<32x128xbf16, #tpu.memory_space<vmem>>, vector<32x128xbf16>
    %cst = arith.constant dense<0.000000e+00> : vector<8x128xf32>
    %3 = tpu.matmul %1, %2, %cst {dimension_numbers = #tpu.dot_dimension_numbers<[1], [0], [0], [1], [0, 0, 1, 1], [], []>} : vector<8x32xbf16>, vector<32x128xbf16>, vector<8x128xf32> -> vector<8x128xf32>
    %c0_3 = arith.constant 0 : index
    %c0_4 = arith.constant 0 : index
    %4 = vector.load %arg3[%c0_3, %c0_4] : memref<1x128xf32, #tpu.memory_space<vmem>>, vector<1x128xf32>
    %5 = vector.broadcast %4 : vector<1x128xf32> to vector<8x128xf32>
    %6 = arith.addf %3, %5 : vector<8x128xf32>
    %cst_5 = arith.constant 0.000000e+00 : f32
    %7 = vector.broadcast %cst_5 : f32 to vector<8x128xf32>
    %8 = arith.maximumf %6, %7 : vector<8x128xf32>
    %9 = arith.truncf %8 : vector<8x128xf32> to vector<8x128xbf16>
    %c0_6 = arith.constant 0 : index
    %c0_7 = arith.constant 0 : index
    %10 = vector.load %arg4[%c0_6, %c0_7] : memref<128x64xbf16, #tpu.memory_space<vmem>>, vector<128x64xbf16>
    %cst_8 = arith.constant dense<0.000000e+00> : vector<8x64xf32>
    %11 = tpu.matmul %9, %10, %cst_8 {dimension_numbers = #tpu.dot_dimension_numbers<[1], [0], [0], [1], [0, 0, 1, 1], [], []>} : vector<8x128xbf16>, vector<128x64xbf16>, vector<8x64xf32> -> vector<8x64xf32>
    %c0_9 = arith.constant 0 : index
    %c0_10 = arith.constant 0 : index
    %12 = vector.load %arg5[%c0_9, %c0_10] : memref<1x64xf32, #tpu.memory_space<vmem>>, vector<1x64xf32>
    %13 = vector.broadcast %12 : vector<1x64xf32> to vector<8x64xf32>
    %14 = arith.addf %11, %13 : vector<8x64xf32>
    %cst_11 = arith.constant 0.000000e+00 : f32
    %15 = vector.broadcast %cst_11 : f32 to vector<8x64xf32>
    %16 = arith.maximumf %14, %15 : vector<8x64xf32>
    %c0_12 = arith.constant 0 : index
    %c0_13 = arith.constant 0 : index
    %17 = vector.load %arg6[%c0_12, %c0_13] : memref<1x64xf32, #tpu.memory_space<vmem>>, vector<1x64xf32>
    %18 = vector.broadcast %17 : vector<1x64xf32> to vector<8x64xf32>
    %19 = arith.mulf %16, %18 : vector<8x64xf32>
    %cst_14 = arith.constant dense<0.000000e+00> : vector<8xf32>
    %20 = vector.multi_reduction <add>, %19, %cst_14 [1] : vector<8x64xf32> to vector<8xf32>
    %c0_15 = arith.constant 0 : index
    %c0_16 = arith.constant 0 : index
    %21 = memref.load %arg7[%c0_15, %c0_16] : memref<1x1xf32, #tpu.memory_space<smem>>
    %22 = vector.broadcast %21 : f32 to vector<8xf32>
    %23 = arith.addf %20, %22 : vector<8xf32>
    %24 = vector.shape_cast %23 : vector<8xf32> to vector<1x8xf32>
    %c0_17 = arith.constant 0 : index
    %c0_18 = arith.constant 0 : index
    %25 = vector.load %arg8[%c0_17, %c0_18] : memref<1x8xf32, #tpu.memory_space<vmem>>, vector<1x8xf32>
    tpu.vector_store %arg8[%c0_17, %c0_18], %24 {strides = array<i32>} : memref<1x8xf32, #tpu.memory_space<vmem>>, vector<1x8xf32>,
    return
  }
  func.func @transform_0(%arg0: i32) -> (i32, i32) {
    %c0_i32 = arith.constant 0 : i32
    %c0_i32_0 = arith.constant 0 : i32
    return %arg0, %c0_i32 : i32, i32
  }
  func.func @transform_1(%arg0: i32) -> (i32, i32) {
    %c0_i32 = arith.constant 0 : i32
    %c0_i32_0 = arith.constant 0 : i32
    %c0_i32_1 = arith.constant 0 : i32
    return %c0_i32, %c0_i32_0 : i32, i32
  }
  func.func @transform_2(%arg0: i32) -> (i32, i32) {
    %c0_i32 = arith.constant 0 : i32
    %c0_i32_0 = arith.constant 0 : i32
    %c0_i32_1 = arith.constant 0 : i32
    return %c0_i32, %c0_i32_0 : i32, i32
  }
  func.func @transform_3(%arg0: i32) -> (i32, i32) {
    %c0_i32 = arith.constant 0 : i32
    %c0_i32_0 = arith.constant 0 : i32
    %c0_i32_1 = arith.constant 0 : i32
    return %c0_i32, %c0_i32_0 : i32, i32
  }
  func.func @transform_4(%arg0: i32) -> (i32, i32) {
    %c0_i32 = arith.constant 0 : i32
    %c0_i32_0 = arith.constant 0 : i32
    %c0_i32_1 = arith.constant 0 : i32
    return %c0_i32, %c0_i32_0 : i32, i32
  }
  func.func @transform_5(%arg0: i32) -> (i32, i32) {
    %c0_i32 = arith.constant 0 : i32
    %c0_i32_0 = arith.constant 0 : i32
    %c0_i32_1 = arith.constant 0 : i32
    return %c0_i32, %c0_i32_0 : i32, i32
  }
  func.func @transform_6(%arg0: i32) -> (i32, i32) {
    %c0_i32 = arith.constant 0 : i32
    %c0_i32_0 = arith.constant 0 : i32
    %c0_i32_1 = arith.constant 0 : i32
    return %c0_i32, %c0_i32_0 : i32, i32
  }
  func.func @transform_7(%arg0: i32) -> (i32, i32) {
    %c0_i32 = arith.constant 0 : i32
    %c0_i32_0 = arith.constant 0 : i32
    return %arg0, %c0_i32 : i32, i32
  }
}

</mosaic_0001>

<bundles_post_ra>
// kernel: tpu_custom_call.1
= control target key start
LH: loop header
LB: loop body
LE: loop exit
PB: predicated region body
PF: predicated region fallthrough
CT: control target
= control target key end

     0   :  { %v340_v1 = vmov 0.0   ;;  %vm341_vm0 = vmmov 0   ;;  %vm54_vm1 = vcmask 261120   ;;  %s431_s0 = inlined_call_operand.vmem [shape: f32[8,32], index: 0, kind: input, shape index: {}]   ;;  %s432_s1 = inlined_call_operand.vmem [shape: bf16[32,128], index: 1, kind: input, shape index: {}]   ;;  %s433_s2 = inlined_call_operand.vmem [shape: f32[1,128], index: 2, kind: input, shape index: {}]   ;;  %s434_s3 = inlined_call_operand.vmem [shape: bf16[128,64], index: 3, kind: input, shape index: {}]   ;;  %s435_s4 = inlined_call_operand.vmem [shape: f32[1,64], index: 4, kind: input, shape index: {}]   ;;  %s436_s5 = inlined_call_operand.vmem [shape: f32[1,64], index: 5, kind: input, shape index: {}]   ;;  %s437_s6 = inlined_call_operand.<no memory space> [shape: f32[1,1], index: 6, kind: input, shape index: {}]   ;;  %s438_s7 = inlined_call_operand.hbm [shape: f32[1,8], index: 7, kind: output, shape index: {}]  }
   0x1   :  { %v308_v0 = vld [vmem:[%s432_s1 + $0x8] sm:$0xff]   ;;  %277 = vmatprep.subr.bf16.mxu0 %v340_v1  ;;  %v309_v2 = vld [vmem:[%s432_s1] sm:$0xff]   ;;  %285 = vmatprep.subr.bf16.mxu1 %v340_v1  ;;  %v310_v4 = vld [vmem:[%s434_s3 + $0x38] sm:$0xff]  }
   0x2   :  { %278 = vmatpush3.bf16.msra.mxu0 %v308_v0  ;;  %281 = vmatprep.mubr.msk.bf16.mxu0 %vm341_vm0, %v340_v1  ;;  %v29_v3 = vld [vmem:[%s431_s0] sm:$0xff]  ;;  %v311_v6 = vld [vmem:[%s434_s3 + $0x30] sm:$0xff]   ;;  %v312_v7 = vld [vmem:[%s434_s3 + $0x28] sm:$0xff]  }
   0x3   :  { %279 = vmatprep.subr.bf16.mxu0 %v340_v1  ;;  %301 = vmatprep.mubr.msk.bf16.mxu1 %vm341_vm0, %v340_v1  ;;  %v30_v5 = vpack.c.bf16 %v29_v3, %v29_v3 }
   0x4   :  { %286 = vmatpush3.bf16.msra.mxu1 %v310_v4 }
   0x5   :  { %287 = vmatprep.subr.bf16.mxu1 %v340_v1 }
   0x6   :  { %280 = vmatpush3.bf16.msra.mxu0 %v309_v2 }
   0x8   :  { %288 = vmatpush3.bf16.msra.mxu1 %v311_v6 }
   0x9   :  { %282 = vmatmul.mubr.msk.bf16.vlgmr.msra.gmra.mxu0 %vm54_vm1, %v30_v5  ;;  %289 = vmatprep.subr.bf16.mxu1 %v340_v1 }
   0xa   :  { %13 = vsyncpa [#allocation4], 0  ;;  %v313_v8 = vld [vmem:[%s434_s3 + $0x20] sm:$0xff]   ;;  %v314_v9 = vld [vmem:[%s434_s3 + $0x18] sm:$0xff]   ;;  %vm220_vm2 = vcmask 523264   ;;  %v228_v31 = vlaneseq  ;;  %v225_v34 = vstv %s437_s6  ;;  %vm235_vm3 = vcmask 57344  }
   0xb   :  { %v315_v10 = vld [vmem:[%s434_s3 + $0x10] sm:$0xff]   ;;  %v316_v11 = vld [vmem:[%s434_s3 + $0x8] sm:$0xff]   ;;  %v317_v12 = vld [vmem:[%s434_s3] sm:$0xff]  }
   0xc   :  { %290 = vmatpush3.bf16.msra.mxu1 %v312_v7  ;;  %v251_v13 = vld [vmem:[%s433_s2] ss:$0 sm:$0xff]  ;;  %v229_v32 = vand.u32 127, %v228_v31  ;;  %v231_v33 = vshrl.u32 %v228_v31, 7 }
   0xd   :  { %291 = vmatprep.subr.bf16.mxu1 %v340_v1  ;;  %v255_v21 = vld [vmem:[%s435_s4] ss:$0 sm:$0xff]  ;;  %s342_s4 = smov [#allocation3]  }
   0xe   :  { %v264_v25 = vld [vmem:[%s436_s5] ss:$0 sm:$0xff]  ;;  %v232_v35 = vsub.s32 %v229_v32, %v231_v33  ;;  %s243_s27 = sshll.u32 %s342_s4, 4  ;;  %s244_s27 = int_to_ptr.vmem [resolvable:$true] %s243_s27 }
   0xf   :  { %s318_s5 = scalar_lea.vmem %s244_s27, 16  ;;  %s322_s28 = scalar_lea.vmem %s244_s27, 32 }
  0x10   :  { %292 = vmatpush3.bf16.msra.mxu1 %v313_v8  ;;  %p319_p0 = scmp.ne.s32.totalorder %s244_s27, %s318_s5  ;;  %p323_p1 = scmp.lt.s32.totalorder %s244_s27, %s244_s27 }
  0x11   :  { %293 = vmatprep.subr.bf16.mxu1 %v340_v1  ;;  %p324_p2 = scmp.lt.s32.totalorder %s322_s28, %s318_s5 }
  0x13   :  { %p325_p3 = por %p324_p2, %p323_p1 }
  0x14   :  { %294 = vmatpush3.bf16.msra.mxu1 %v314_v9 }
  0x15   :  { %295 = vmatprep.subr.bf16.mxu1 %v340_v1  ;;  %p326_p4 = pnand %p325_p3, %p319_p0 }
  0x18   :  { %296 = vmatpush3.bf16.msra.mxu1 %v315_v10 }
  0x19   :  { %297 = vmatprep.subr.bf16.mxu1 %v340_v1 }
  0x1c   :  { %298 = vmatpush3.bf16.msra.mxu1 %v316_v11 }
  0x1d   :  { %299 = vmatprep.subr.bf16.mxu1 %v340_v1 }
  0x20   :  { %300 = vmatpush3.bf16.msra.mxu1 %v317_v12 }
  0xc9   :  { %v92_v14 = vpop.f32.mrf.mxu0 }
  0xca   :  { %v93_v15 = vadd.f32 %v251_v13, %v92_v14 }
  0xcb   :  { %v283_v16 = vpop.f32.mrf.mxu0 }
  0xcc   :  { %v98_v17 = vmax.f32 %v93_v15, 0.0 }
  0xcd   :  { %v95_v18 = vpop.f32.mrf.mxu0 }
  0xce   :  { %v99_v19 = vpack.c.bf16 %v98_v17, %v98_v17 }
  0xcf   :  { %v284_v20 = vpop.f32.mrf.mxu0 }
  0xd0   :  { %302 = vmatmul.mubr.bf16.vlgmr.msra.gmra.mxu1 %v99_v19 }
 0x190   :  { %v205_v22 = vpop.f32.mrf.mxu1 }
 0x191   :  { %v206_v23 = vadd.f32 %v255_v21, %v205_v22 }
 0x192   :  { %v303_v24 = vpop.f32.mrf.mxu1 }
 0x193   :  { %v211_v26 = vmax.f32 %v206_v23, 0.0 }
 0x194   :  { %v208_v27 = vpop.f32.mrf.mxu1 }
 0x195   :  { %v219_v28 = vmul.f32 %v264_v25, %v211_v26 }
 0x196   :  { %v304_v29 = vpop.f32.mrf.mxu1 }
 0x197   :  { %v221_v30 = vsel %vm220_vm2, %v219_v28, 0.0 }
 0x198   :  { %222 = vadd.xlane.f32.xlu0 %v221_v30 }
 0x221   :  { %v223_v36 = vpop.xlane.xlu0 %222 }
 0x222   :  { %v226_v37 = vadd.f32 %v225_v34, %v223_v36 }
 0x224   :  { %v233_v38 = vrot.slane %v226_v37, %v232_v35 }
 0x226   :  { %236 = vst.msk [vmem:[#allocation3] sm:$0x1] %vm235_vm3, %v233_v38 }
 0x227   :  { %329 = shalt.err (!%p326_p4)
}
 0x228   :  { %246 = dma.vmem_to_hbm [thread:$0]  %s244_s27, 16, %s438_s7, [#allocation4]  }
 0x229   :  { %338 = dma.done.wait [#allocation4], 16  }
 0x22a   :  { %339 = vsyncadd [#allocation4], 4294967280 }
 0x22b   :  { %250 = vsyncpa [#allocation4], 1 }

</bundles_post_ra>
